<compile_context>
chip_gen: v6e
topology: v6e:2x2x1
jax: 0.10.0
libtpu: 0.0.40
codegen_flags: <defaults>
</compile_context>

<pallas_src>
import jax
import jax.numpy as jnp
from jax import lax
from jax.experimental import pallas as pl
from jax.experimental.pallas import tpu as pltpu


def _round_up(x, m):
    return (x + m - 1) // m * m


def _pad_to(a, shape):
    pads = [(0, s - d) for d, s in zip(a.shape, shape)]
    if any(hi for _, hi in pads):
        a = jnp.pad(a, pads)
    return a


def _make_vi_kernel(*, D, d_latent, Lx, Ly, tl, compute_z, mask_x, mask_y):
    """Fused tiled pooling-encode + projection + reparameterisation kernel."""

    def pool(e, l, true_len, need_mask):
        # e: (tb, tl, D) f32 tile.  Sum / max over the valid L rows only.
        if need_mask:
            pos = l * tl + lax.broadcasted_iota(jnp.int32, (tl, D), 0)
            valid = (pos < true_len)[None]                  # (1, tl, D)
            s = jnp.where(valid, e, 0.0).sum(axis=1)
            m = jnp.where(valid, e, -jnp.inf).max(axis=1)
        else:
            s = e.sum(axis=1)
            m = e.max(axis=1)
        return s, m                                         # each (tb, D)

    def kernel(xe_ref, ye_ref, w_ref, b_ref, eps_ref, out_ref,
               sx_ref, mx_ref, sy_ref, my_ref):
        l = pl.program_id(1)

        # ---- init resident pooling accumulators on the first L tile ----
        @pl.when(l == 0)
        def _init():
            sx_ref[...] = jnp.zeros(sx_ref.shape, jnp.float32)
            sy_ref[...] = jnp.zeros(sy_ref.shape, jnp.float32)
            mx_ref[...] = jnp.full(mx_ref.shape, -jnp.inf, jnp.float32)
            my_ref[...] = jnp.full(my_ref.shape, -jnp.inf, jnp.float32)

        # bf16 (or f32) streamed tile -> one upcast; all pooling math in f32
        # (v5e's VPU has no bf16 elementwise support).
        xe = xe_ref[...].astype(jnp.float32)
        ye = ye_ref[...].astype(jnp.float32)

        xs, xm = pool(xe, l, Lx, mask_x)
        ys, ym = pool(ye, l, Ly, mask_y)

        sx_ref[...] += xs
        sy_ref[...] += ys
        mx_ref[...] = jnp.maximum(mx_ref[...], xm)
        my_ref[...] = jnp.maximum(my_ref[...], ym)

        # ---- finalize on the last L tile --------------------------------
        @pl.when(l == pl.num_programs(1) - 1)
        def _finalize():
            # Bilingual feature (tb, 4*D); built once per batch tile.  (With a
            # lane-aligned D >= 128 the slabs could be written straight into a
            # (tb, 4*D) scratch instead of this one-off concat.)
            feat = jnp.concatenate(
                [sx_ref[...] * (1.0 / Lx), mx_ref[...],
                 sy_ref[...] * (1.0 / Ly), my_ref[...]], axis=-1)
            # Single MXU call: K = 4*D, N = 2*d_latent (mean || logv fused).
            proj = jnp.dot(feat, w_ref[...],
                           preferred_element_type=jnp.float32) + b_ref[...]
            if compute_z:
                mean = proj[:, 0:d_latent]
                logv = proj[:, d_latent:2 * d_latent]
                z = eps_ref[...] * jnp.exp(0.5 * logv) + mean
                out_ref[...] = jnp.concatenate([proj, z], axis=-1)
            else:
                out_ref[...] = proj

    return kernel


def variational_inferrer_forward(x_ids, y_ids, params, noise=None, *,
                                 is_sampling=True, stop_grad_input=True,
                                 stream_dtype=jnp.bfloat16,
                                 tb=None, tl=None):
    """Mirrors `_VariationalInferrer.forward` (should_swap=False).

    `noise` is the torch.randn([B, d_latent]) equivalent (explicit input);
    only needed when is_sampling=True.
    """
    B, Lx = x_ids.shape
    _, Ly = y_ids.shape
    D = params["src_embed"].shape[1]
    dl = params["w_mean"].shape[1]

    # ---- glue: embedding gather (kept outside the kernel) ---------------
    src_emb = jnp.take(params["src_embed"], x_ids, axis=0).astype(stream_dtype)
    tgt_emb = jnp.take(params["tgt_embed"], y_ids, axis=0).astype(stream_dtype)
    if stop_grad_input:
        src_emb = jax.lax.stop_gradient(src_emb)
        tgt_emb = jax.lax.stop_gradient(tgt_emb)

    # ---- fuse the two projections into one (4*D, 2*dl) weight -----------
    w_cat = jnp.concatenate([params["w_mean"], params["w_logv"]], axis=1)
    b_cat = jnp.concatenate([params["b_mean"], params["b_logv"]], axis=1)

    # ---- tiling ----------------------------------------------------------
    itemsize = jnp.dtype(stream_dtype).itemsize
    if tb is None:
        tb = B if B <= 8 else min(128, _round_up(B, 8))
    B_pad = _round_up(B, tb)
    n_b = B_pad // tb

    if tl is None:
        # Keep 2 inputs x 2 pipeline buffers of (tb, tl, D) within ~8 MiB:
        # safe under v5e's 16 MiB scoped-VMEM default and v7x's 64 MiB VMEM.
        budget = 8 * 1024 * 1024
        tl = max(8, (budget // (4 * tb * D * itemsize)) // 8 * 8)
    tl = max(8, _round_up(tl, 8))
    L_max = max(Lx, Ly)
    tl = min(tl, _round_up(L_max, 8))
    L_pad = _round_up(L_max, tl)
    n_l = L_pad // tl

    src_emb = _pad_to(src_emb, (B_pad, L_pad, D))
    tgt_emb = _pad_to(tgt_emb, (B_pad, L_pad, D))

    if noise is None:
        noise = jnp.zeros((B, dl), jnp.float32)
    noise_p = _pad_to(noise.astype(jnp.float32), (B_pad, dl))

    out_w = 3 * dl if is_sampling else 2 * dl

    kernel = _make_vi_kernel(
        D=D, d_latent=dl, Lx=Lx, Ly=Ly, tl=tl, compute_z=is_sampling,
        mask_x=(L_pad != Lx), mask_y=(L_pad != Ly))

    packed = pl.pallas_call(
        kernel,
        out_shape=jax.ShapeDtypeStruct((B_pad, out_w), jnp.float32),
        grid_spec=pltpu.PrefetchScalarGridSpec(
            num_scalar_prefetch=0,
            grid=(n_b, n_l),
            in_specs=[
                pl.BlockSpec((tb, tl, D), lambda b, l: (b, l, 0)),    # emb(x)
                pl.BlockSpec((tb, tl, D), lambda b, l: (b, l, 0)),    # emb(y)
                pl.BlockSpec((4 * D, 2 * dl), lambda b, l: (0, 0)),   # W fused
                pl.BlockSpec((1, 2 * dl), lambda b, l: (0, 0)),       # bias
                pl.BlockSpec((tb, dl), lambda b, l: (b, 0)),          # eps
            ],
            out_specs=pl.BlockSpec((tb, out_w), lambda b, l: (b, 0)),
            scratch_shapes=[pltpu.VMEM((tb, D), jnp.float32),   # sum(x)
                            pltpu.VMEM((tb, D), jnp.float32),   # max(x)
                            pltpu.VMEM((tb, D), jnp.float32),   # sum(y)
                            pltpu.VMEM((tb, D), jnp.float32)],  # max(y)
        ),
        compiler_params=pltpu.CompilerParams(
            dimension_semantics=("parallel", "arbitrary")),
    )(src_emb, tgt_emb, w_cat, b_cat, noise_p)

    mean = packed[:B, 0:dl]
    logv = packed[:B, dl:2 * dl]
    latent = packed[:B, 2 * dl:3 * dl] if is_sampling else mean
    return {"mean": mean, "logv": logv, "latent": latent}


def init_params(key, n_src_vocab, n_tgt_vocab, d_word_vec, d_model, d_latent):
    assert d_word_vec == d_model, "encode stand-in assumes d_word_vec == d_model"
    ks = jax.random.split(key, 6)
    # nn.Linear(d_model*4, d_latent): weight (out, in) -> stored transposed.
    scale = 1.0 / jnp.sqrt(4.0 * d_model)
    return {
        "src_embed": jax.random.normal(ks[0], (n_src_vocab, d_word_vec), jnp.float32) * 0.02,
        "tgt_embed": jax.random.normal(ks[1], (n_tgt_vocab, d_word_vec), jnp.float32) * 0.02,
        "w_mean": jax.random.uniform(ks[2], (4 * d_model, d_latent), jnp.float32,
                                     minval=-scale, maxval=scale),
        "b_mean": jax.random.uniform(ks[3], (1, d_latent), jnp.float32,
                                     minval=-scale, maxval=scale),
        "w_logv": jax.random.uniform(ks[4], (4 * d_model, d_latent), jnp.float32,
                                     minval=-scale, maxval=scale),
        "b_logv": jax.random.uniform(ks[5], (1, d_latent), jnp.float32,
                                     minval=-scale, maxval=scale),
    }


def _reference(x_ids, y_ids, params, noise, stream_dtype, is_sampling):
    """Pure-JAX reference using the same streamed-activation precision."""
    se = jnp.take(params["src_embed"], x_ids, axis=0).astype(stream_dtype).astype(jnp.float32)
    te = jnp.take(params["tgt_embed"], y_ids, axis=0).astype(stream_dtype).astype(jnp.float32)
    feat = jnp.concatenate([se.mean(1), se.max(1), te.mean(1), te.max(1)], axis=-1)
    mean = feat @ params["w_mean"] + params["b_mean"]
    logv = feat @ params["w_logv"] + params["b_logv"]
    latent = noise * jnp.exp(0.5 * logv) + mean if is_sampling else mean
    return mean, logv, latent


if __name__ == "__main__":
    B = 2
    n_src_vocab, n_tgt_vocab = 100, 120
    d_word_vec = d_model = 32
    d_latent = 16

    key = jax.random.PRNGKey(0)
    kp, kx, ky, kx2, kn = jax.random.split(key, 5)
    params = init_params(kp, n_src_vocab, n_tgt_vocab, d_word_vec, d_model, d_latent)
    noise = jax.random.normal(kn, (B, d_latent), jnp.float32)

    def check(out, x_ids, y_ids, is_sampling):
        m_r, v_r, z_r = _reference(x_ids, y_ids, params, noise, jnp.bfloat16, is_sampling)
        assert jnp.allclose(out["mean"], m_r, atol=1e-4, rtol=1e-3), float(jnp.abs(out["mean"] - m_r).max())
        assert jnp.allclose(out["logv"], v_r, atol=1e-4, rtol=1e-3), float(jnp.abs(out["logv"] - v_r).max())
        assert jnp.allclose(out["latent"], z_r, atol=1e-4, rtol=1e-3), float(jnp.abs(out["latent"] - z_r).max())

    # Case 1: equal-length sequences, two L tiles (exercises the pipelined
    # pooling accumulators), sampling path.
    x1 = jax.random.randint(kx, (B, 16), 0, n_src_vocab, dtype=jnp.int32)
    y1 = jax.random.randint(ky, (B, 16), 0, n_tgt_vocab, dtype=jnp.int32)
    out1 = variational_inferrer_forward(x1, y1, params, noise, is_sampling=True, tl=8)
    jax.block_until_ready(out1)
    check(out1, x1, y1, True)

    # Case 2: non-sampling path (no reparameterisation, narrower packed output).
    out2 = variational_inferrer_forward(x1, y1, params, None, is_sampling=False, tl=8)
    jax.block_until_ready(out2)
    check(out2, x1, y1, False)

    # Case 3: unequal, non-tile-multiple source length (exercises the L mask
    # and -inf / true-length handling on partial tiles).
    x3 = jax.random.randint(kx2, (B, 12), 0, n_src_vocab, dtype=jnp.int32)
    out3 = variational_inferrer_forward(x3, y1, params, noise, is_sampling=True, tl=8)
    jax.block_until_ready(out3)
    check(out3, x3, y1, True)

    print("KERNEL_OK")
</pallas_src>

<mosaic_0001>
module attributes {stable_mosaic.version = 11 : i64} {
  func.func @kernel(%arg0: i32, %arg1: i32, %arg2: memref<2x8x32xbf16, #tpu.memory_space<vmem>>, %arg3: memref<2x8x32xbf16, #tpu.memory_space<vmem>>, %arg4: memref<128x32xf32, #tpu.memory_space<vmem>>, %arg5: memref<1x32xf32, #tpu.memory_space<vmem>>, %arg6: memref<2x16xf32, #tpu.memory_space<vmem>>, %arg7: memref<2x48xf32, #tpu.memory_space<vmem>>, %arg8: memref<2x32xf32, #tpu.memory_space<vmem>>, %arg9: memref<2x32xf32, #tpu.memory_space<vmem>>, %arg10: memref<2x32xf32, #tpu.memory_space<vmem>>, %arg11: memref<2x32xf32, #tpu.memory_space<vmem>>) attributes {dimension_semantics = [#tpu.dimension_semantics<parallel>, #tpu.dimension_semantics<arbitrary>], iteration_bounds = array<i64: 1, 2>, scalar_prefetch = 0 : i64, scratch_operands = 4 : i64, tpu.core_type = #tpu.core_type<tc>, window_params = [{transform_indices = @transform_0, window_bounds = array<i64: 2, 8, 32>}, {transform_indices = @transform_1, window_bounds = array<i64: 2, 8, 32>}, {pipeline_mode = #tpu.pipeline_mode<synchronous>, transform_indices = @transform_2, window_bounds = array<i64: 128, 32>}, {pipeline_mode = #tpu.pipeline_mode<synchronous>, transform_indices = @transform_3, window_bounds = array<i64: 1, 32>}, {transform_indices = @transform_4, window_bounds = array<i64: 2, 16>}, {transform_indices = @transform_5, window_bounds = array<i64: 2, 48>}]} {
    %c0_i32 = arith.constant 0 : i32
    %0 = arith.cmpi eq, %arg1, %c0_i32 : i32
    %1 = arith.extui %0 : i1 to i32
    %c0_i32_0 = arith.constant 0 : i32
    %2 = arith.cmpi ne, %1, %c0_i32_0 : i32
    scf.if %2 {
      %cst_26 = arith.constant 0.000000e+00 : f32
      %26 = vector.broadcast %cst_26 : f32 to vector<2x32xf32>
      %c0_27 = arith.constant 0 : index
      %c0_28 = arith.constant 0 : index
      %27 = vector.load %arg8[%c0_27, %c0_28] : memref<2x32xf32, #tpu.memory_space<vmem>>, vector<2x32xf32>
      tpu.vector_store %arg8[%c0_27, %c0_28], %26 {strides = array<i32>} : memref<2x32xf32, #tpu.memory_space<vmem>>, vector<2x32xf32>,
      %cst_29 = arith.constant 0.000000e+00 : f32
      %28 = vector.broadcast %cst_29 : f32 to vector<2x32xf32>
      %c0_30 = arith.constant 0 : index
      %c0_31 = arith.constant 0 : index
      %29 = vector.load %arg10[%c0_30, %c0_31] : memref<2x32xf32, #tpu.memory_space<vmem>>, vector<2x32xf32>
      tpu.vector_store %arg10[%c0_30, %c0_31], %28 {strides = array<i32>} : memref<2x32xf32, #tpu.memory_space<vmem>>, vector<2x32xf32>,
      %cst_32 = arith.constant 0xFF800000 : f32
      %30 = vector.broadcast %cst_32 : f32 to vector<2x32xf32>
      %c0_33 = arith.constant 0 : index
      %c0_34 = arith.constant 0 : index
      %31 = vector.load %arg9[%c0_33, %c0_34] : memref<2x32xf32, #tpu.memory_space<vmem>>, vector<2x32xf32>
      tpu.vector_store %arg9[%c0_33, %c0_34], %30 {strides = array<i32>} : memref<2x32xf32, #tpu.memory_space<vmem>>, vector<2x32xf32>,
      %cst_35 = arith.constant 0xFF800000 : f32
      %32 = vector.broadcast %cst_35 : f32 to vector<2x32xf32>
      %c0_36 = arith.constant 0 : index
      %c0_37 = arith.constant 0 : index
      %33 = vector.load %arg11[%c0_36, %c0_37] : memref<2x32xf32, #tpu.memory_space<vmem>>, vector<2x32xf32>
      tpu.vector_store %arg11[%c0_36, %c0_37], %32 {strides = array<i32>} : memref<2x32xf32, #tpu.memory_space<vmem>>, vector<2x32xf32>,
    } else {
    }
    %c0 = arith.constant 0 : index
    %c0_1 = arith.constant 0 : index
    %c0_2 = arith.constant 0 : index
    %3 = vector.load %arg2[%c0, %c0_1, %c0_2] : memref<2x8x32xbf16, #tpu.memory_space<vmem>>, vector<2x8x32xbf16>
    %4 = arith.extf %3 : vector<2x8x32xbf16> to vector<2x8x32xf32>
    %c0_3 = arith.constant 0 : index
    %c0_4 = arith.constant 0 : index
    %c0_5 = arith.constant 0 : index
    %5 = vector.load %arg3[%c0_3, %c0_4, %c0_5] : memref<2x8x32xbf16, #tpu.memory_space<vmem>>, vector<2x8x32xbf16>
    %6 = arith.extf %5 : vector<2x8x32xbf16> to vector<2x8x32xf32>
    %cst = arith.constant dense<0.000000e+00> : vector<2x32xf32>
    %7 = vector.multi_reduction <add>, %4, %cst [1] : vector<2x8x32xf32> to vector<2x32xf32>
    %cst_6 = arith.constant dense<0xFF800000> : vector<2x32xf32>
    %8 = vector.multi_reduction <maximumf>, %4, %cst_6 [1] : vector<2x8x32xf32> to vector<2x32xf32>
    %cst_7 = arith.constant dense<0.000000e+00> : vector<2x32xf32>
    %9 = vector.multi_reduction <add>, %6, %cst_7 [1] : vector<2x8x32xf32> to vector<2x32xf32>
    %cst_8 = arith.constant dense<0xFF800000> : vector<2x32xf32>
    %10 = vector.multi_reduction <maximumf>, %6, %cst_8 [1] : vector<2x8x32xf32> to vector<2x32xf32>
    %c0_9 = arith.constant 0 : index
    %c0_10 = arith.constant 0 : index
    %11 = vector.load %arg8[%c0_9, %c0_10] : memref<2x32xf32, #tpu.memory_space<vmem>>, vector<2x32xf32>
    %12 = arith.addf %11, %7 : vector<2x32xf32>
    %c0_11 = arith.constant 0 : index
    %c0_12 = arith.constant 0 : index
    %13 = vector.load %arg8[%c0_11, %c0_12] : memref<2x32xf32, #tpu.memory_space<vmem>>, vector<2x32xf32>
    tpu.vector_store %arg8[%c0_11, %c0_12], %12 {strides = array<i32>} : memref<2x32xf32, #tpu.memory_space<vmem>>, vector<2x32xf32>,
    %c0_13 = arith.constant 0 : index
    %c0_14 = arith.constant 0 : index
    %14 = vector.load %arg10[%c0_13, %c0_14] : memref<2x32xf32, #tpu.memory_space<vmem>>, vector<2x32xf32>
    %15 = arith.addf %14, %9 : vector<2x32xf32>
    %c0_15 = arith.constant 0 : index
    %c0_16 = arith.constant 0 : index
    %16 = vector.load %arg10[%c0_15, %c0_16] : memref<2x32xf32, #tpu.memory_space<vmem>>, vector<2x32xf32>
    tpu.vector_store %arg10[%c0_15, %c0_16], %15 {strides = array<i32>} : memref<2x32xf32, #tpu.memory_space<vmem>>, vector<2x32xf32>,
    %c0_17 = arith.constant 0 : index
    %c0_18 = arith.constant 0 : index
    %17 = vector.load %arg9[%c0_17, %c0_18] : memref<2x32xf32, #tpu.memory_space<vmem>>, vector<2x32xf32>
    %18 = arith.maximumf %17, %8 : vector<2x32xf32>
    %c0_19 = arith.constant 0 : index
    %c0_20 = arith.constant 0 : index
    %19 = vector.load %arg9[%c0_19, %c0_20] : memref<2x32xf32, #tpu.memory_space<vmem>>, vector<2x32xf32>
    tpu.vector_store %arg9[%c0_19, %c0_20], %18 {strides = array<i32>} : memref<2x32xf32, #tpu.memory_space<vmem>>, vector<2x32xf32>,
    %c0_21 = arith.constant 0 : index
    %c0_22 = arith.constant 0 : index
    %20 = vector.load %arg11[%c0_21, %c0_22] : memref<2x32xf32, #tpu.memory_space<vmem>>, vector<2x32xf32>
    %21 = arith.maximumf %20, %10 : vector<2x32xf32>
    %c0_23 = arith.constant 0 : index
    %c0_24 = arith.constant 0 : index
    %22 = vector.load %arg11[%c0_23, %c0_24] : memref<2x32xf32, #tpu.memory_space<vmem>>, vector<2x32xf32>
    tpu.vector_store %arg11[%c0_23, %c0_24], %21 {strides = array<i32>} : memref<2x32xf32, #tpu.memory_space<vmem>>, vector<2x32xf32>,
    %c1_i32 = arith.constant 1 : i32
    %23 = arith.cmpi eq, %arg1, %c1_i32 : i32
    %24 = arith.extui %23 : i1 to i32
    %c0_i32_25 = arith.constant 0 : i32
    %25 = arith.cmpi ne, %24, %c0_i32_25 : i32
    scf.if %25 {
      %c0_26 = arith.constant 0 : index
      %c0_27 = arith.constant 0 : index
      %26 = vector.load %arg8[%c0_26, %c0_27] : memref<2x32xf32, #tpu.memory_space<vmem>>, vector<2x32xf32>
      %cst_28 = arith.constant 6.250000e-02 : f32
      %27 = vector.broadcast %cst_28 : f32 to vector<2x32xf32>
      %28 = arith.mulf %26, %27 : vector<2x32xf32>
      %c0_29 = arith.constant 0 : index
      %c0_30 = arith.constant 0 : index
      %29 = vector.load %arg9[%c0_29, %c0_30] : memref<2x32xf32, #tpu.memory_space<vmem>>, vector<2x32xf32>
      %c0_31 = arith.constant 0 : index
      %c0_32 = arith.constant 0 : index
      %30 = vector.load %arg10[%c0_31, %c0_32] : memref<2x32xf32, #tpu.memory_space<vmem>>, vector<2x32xf32>
      %cst_33 = arith.constant 6.250000e-02 : f32
      %31 = vector.broadcast %cst_33 : f32 to vector<2x32xf32>
      %32 = arith.mulf %30, %31 : vector<2x32xf32>
      %c0_34 = arith.constant 0 : index
      %c0_35 = arith.constant 0 : index
      %33 = vector.load %arg11[%c0_34, %c0_35] : memref<2x32xf32, #tpu.memory_space<vmem>>, vector<2x32xf32>
      %34 = tpu.concatenate %28, %29, %32, %33 in 1 : vector<2x32xf32>, vector<2x32xf32>, vector<2x32xf32>, vector<2x32xf32> -> vector<2x128xf32>
      %c0_36 = arith.constant 0 : index
      %c0_37 = arith.constant 0 : index
      %35 = vector.load %arg4[%c0_36, %c0_37] : memref<128x32xf32, #tpu.memory_space<vmem>>, vector<128x32xf32>
      %cst_38 = arith.constant dense<0.000000e+00> : vector<2x32xf32>
      %36 = tpu.matmul %34, %35, %cst_38 {dimension_numbers = #tpu.dot_dimension_numbers<[1], [0], [0], [1], [0, 0, 1, 1], [], []>} : vector<2x128xf32>, vector<128x32xf32>, vector<2x32xf32> -> vector<2x32xf32>
      %c0_39 = arith.constant 0 : index
      %c0_40 = arith.constant 0 : index
      %37 = vector.load %arg5[%c0_39, %c0_40] : memref<1x32xf32, #tpu.memory_space<vmem>>, vector<1x32xf32>
      %38 = vector.broadcast %37 : vector<1x32xf32> to vector<2x32xf32>
      %39 = arith.addf %36, %38 : vector<2x32xf32>
      %40 = vector.extract_strided_slice %39 {offsets = [0, 0], sizes = [2, 16], strides = [1, 1]} : vector<2x32xf32> to vector<2x16xf32>
      %41 = vector.extract_strided_slice %39 {offsets = [0, 16], sizes = [2, 16], strides = [1, 1]} : vector<2x32xf32> to vector<2x16xf32>
      %c0_41 = arith.constant 0 : index
      %c0_42 = arith.constant 0 : index
      %42 = vector.load %arg6[%c0_41, %c0_42] : memref<2x16xf32, #tpu.memory_space<vmem>>, vector<2x16xf32>
      %cst_43 = arith.constant 5.000000e-01 : f32
      %43 = vector.broadcast %cst_43 : f32 to vector<2x16xf32>
      %44 = arith.mulf %43, %41 : vector<2x16xf32>
      %45 = math.exp %44 : vector<2x16xf32>
      %46 = arith.mulf %42, %45 : vector<2x16xf32>
      %47 = arith.addf %46, %40 : vector<2x16xf32>
      %48 = tpu.concatenate %39, %47 in 1 : vector<2x32xf32>, vector<2x16xf32> -> vector<2x48xf32>
      %c0_44 = arith.constant 0 : index
      %c0_45 = arith.constant 0 : index
      %49 = vector.load %arg7[%c0_44, %c0_45] : memref<2x48xf32, #tpu.memory_space<vmem>>, vector<2x48xf32>
      tpu.vector_store %arg7[%c0_44, %c0_45], %48 {strides = array<i32>} : memref<2x48xf32, #tpu.memory_space<vmem>>, vector<2x48xf32>,
    } else {
    }
    return
  }
  func.func @transform_0(%arg0: i32, %arg1: i32) -> (i32, i32, i32) {
    %c0_i32 = arith.constant 0 : i32
    %c0_i32_0 = arith.constant 0 : i32
    return %arg0, %arg1, %c0_i32 : i32, i32, i32
  }
  func.func @transform_1(%arg0: i32, %arg1: i32) -> (i32, i32, i32) {
    %c0_i32 = arith.constant 0 : i32
    %c0_i32_0 = arith.constant 0 : i32
    return %arg0, %arg1, %c0_i32 : i32, i32, i32
  }
  func.func @transform_2(%arg0: i32, %arg1: i32) -> (i32, i32) {
    %c0_i32 = arith.constant 0 : i32
    %c0_i32_0 = arith.constant 0 : i32
    %c0_i32_1 = arith.constant 0 : i32
    return %c0_i32, %c0_i32_0 : i32, i32
  }
  func.func @transform_3(%arg0: i32, %arg1: i32) -> (i32, i32) {
    %c0_i32 = arith.constant 0 : i32
    %c0_i32_0 = arith.constant 0 : i32
    %c0_i32_1 = arith.constant 0 : i32
    return %c0_i32, %c0_i32_0 : i32, i32
  }
  func.func @transform_4(%arg0: i32, %arg1: i32) -> (i32, i32) {
    %c0_i32 = arith.constant 0 : i32
    %c0_i32_0 = arith.constant 0 : i32
    return %arg0, %c0_i32 : i32, i32
  }
  func.func @transform_5(%arg0: i32, %arg1: i32) -> (i32, i32) {
    %c0_i32 = arith.constant 0 : i32
    %c0_i32_0 = arith.constant 0 : i32
    return %arg0, %c0_i32 : i32, i32
  }
}

</mosaic_0001>

<bundles_post_ra>
// kernel: tpu_custom_call.1
= control target key start
LH: loop header
LB: loop body
LE: loop exit
PB: predicated region body
PF: predicated region fallthrough
CT: control target
= control target key end

     0   :  { %10 = vsyncpa [#allocation9], 0  ;;  %s956_s18 = smov 0   ;;  %s958_s19 = smov 0   ;;  %s1124_s0 = inlined_call_operand.vmem [shape: bf16[2,16,32], index: 0, kind: input, shape index: {}]   ;;  %s1125_s1 = inlined_call_operand.vmem [shape: bf16[2,16,32], index: 1, kind: input, shape index: {}]   ;;  %s1126_s2 = inlined_call_operand.vmem [shape: f32[128,32], index: 2, kind: input, shape index: {}]   ;;  %s1127_s3 = inlined_call_operand.vmem [shape: f32[1,32], index: 3, kind: input, shape index: {}]   ;;  %s1128_s4 = inlined_call_operand.vmem [shape: f32[2,16], index: 4, kind: input, shape index: {}]   ;;  %s1129_s5 = inlined_call_operand.hbm [shape: f32[2,48], index: 5, kind: output, shape index: {}]  }
   0x1   :  { %s960_s20 = smov 0   ;;  %s962_s21 = smov 0  }
   0x2   :  { %s964_s22 = smov 0  }
   0x3 LB: > { %s714_s23 = sadd.s32 4294967295, %s915_s22   ;;  %s25_s24 = sadd.s32 1, %s911_s21  ;;  %s915_s22 = sphi %s964_s22, %s16_s22   ;;  %s911_s21 = sphi %s962_s21, %s1135_s21   ;;  %s907_s20 = sphi %s960_s20, %s1134_s20   ;;  %s903_s19 = sphi %s958_s19, %s1133_s19   ;;  %s899_s18 = sphi %s956_s18, %s1132_s18  }
   0x4   : > { %p26_p0 = scmp.ge.s32.totalorder %s25_s24, 2  ;;  %p44_p1 = scmp.ne.s32.totalorder %s903_s19, %s899_s18 }
   0x5   : > { %p45_p2 = scmp.eq.s32.totalorder %s915_s22, 0  ;;  %s37_s27 = sadd.s32 1, %s903_s19 }
   0x6   : > { %s1137_s24 = smov (%p26_p0, %s25_s24), 0  ;;  %p717_p5 = scmp.ge.s32.totalorder %s915_s22, 2 }
   0x7   : > { %p988_p3 = por %p45_p2, %p44_p1  ;;  %s33_s26 = ssub.s32 %s911_s21, %s1137_s24 }
   0x8   : > { %p35_p4 = scmp.eq.s32.totalorder %s33_s26, 0  ;;  %205 = sbr.rel (%p717_p5) target bundleno = 23 (0x17), region = 28 }
   0xa   : > { %s996_s28 = scalar_select %p35_p4, %s903_s19, %s37_s27  }
   0xd   : > { %208 = sbr.rel (!%p988_p3) target bundleno = 18 (0x12), region = 32  ;;  %s210_s29 = sand.u32 (%p988_p3), 1, %s903_s19  }
   0xe   : > { %s719_s30 = sshll.u32 (%p988_p3), %s911_s21, 2  ;;  %s718_s6 = sshll.u32 (%p988_p3), %s210_s29, 3 }
   0xf   : > { %s217_s9 = scalar_lea.vmem (%p988_p3), %s1124_s0, %s719_s30  ;;  %s212_s10 = scalar_lea.vmem (%p988_p3), [#allocation6], %s718_s6 }
  0x10   : > { %v234_v0 = vld [vmem:[%s217_s9] sm:$0xf] (%p988_p3)  ;;  %v236_v1 = vld [vmem:[%s217_s9 + $0x8] sm:$0xf] (%p988_p3) }
  0x11   : > { %235 = vst [vmem:[%s212_s10] sm:$0xf] (%p988_p3), %v234_v0  ;;  %237 = vst [vmem:[%s212_s10 + $0x4] sm:$0xf] (%p988_p3), %v236_v1 }
  0x12 PF: > { %265 = sbr.rel (!%p988_p3) target bundleno = 23 (0x17), region = 73  ;;  %s267_s11 = sand.u32 (%p988_p3), 1, %s903_s19  }
  0x13   : > { %s721_s12 = sshll.u32 (%p988_p3), %s911_s21, 2  ;;  %s720_s13 = sshll.u32 (%p988_p3), %s267_s11, 3 }
  0x14   : > { %s274_s16 = scalar_lea.vmem (%p988_p3), %s1125_s1, %s721_s12  ;;  %s269_s17 = scalar_lea.vmem (%p988_p3), [#allocation7], %s720_s13 }
  0x15   : > { %v291_v2 = vld [vmem:[%s274_s16] sm:$0xf] (%p988_p3)  ;;  %v293_v3 = vld [vmem:[%s274_s16 + $0x8] sm:$0xf] (%p988_p3) }
  0x16   : > { %292 = vst [vmem:[%s269_s17] sm:$0xf] (%p988_p3), %v291_v2  ;;  %294 = vst [vmem:[%s269_s17 + $0x4] sm:$0xf] (%p988_p3), %v293_v3 }
  0x17 PF: > { %p722_p6 = scmp.ge.s32.totalorder %s915_s22, 1  ;;  %p321_p7 = scmp.lt.s32.totalorder %s915_s22, 3 }
  0x19   : > { %p322_p8 = pnand %p722_p6, %p321_p7 }
  0x1a   : > { %s328_s25 = sand.u32 (!%p322_p8), 1, %s899_s18   ;;  %p725_p9 = scmp.ne.s32.totalorder (!%p322_p8), %s907_s20, 0 }
  0x1b   : > { %325 = sbr.rel (%p322_p8) target bundleno = 653 (0x28d), region = 114  ;;  %s723_s26 = sshll.u32 (!%p322_p8), %s328_s25, 3 }
  0x1c   : > { %s330_s27 = scalar_lea.vmem (!%p322_p8), [#allocation6], %s723_s26  ;;  %s337_s29 = scalar_lea.vmem (!%p322_p8), [#allocation7], %s723_s26 }
  0x20   : > { %374 = sbr.rel (%p725_p9) target bundleno = 40 (0x28), region = 126 }
  0x25   : > { %vm375_vm0 = vcmask 254976   ;;  %v917_v4 = vmov 0.0   ;;  %v918_v5 = vmov -inf  }
  0x26   : > { %376 = vst.msk [vmem:[#allocation2] sm:$0x3] %vm375_vm0, %v917_v4  ;;  %377 = vst.msk [vmem:[#allocation4] sm:$0x3] %vm375_vm0, %v917_v4 }
  0x27   : > { %378 = vst.msk [vmem:[#allocation3] sm:$0x3] %vm375_vm0, %v918_v5  ;;  %379 = vst.msk [vmem:[#allocation5] sm:$0x3] %vm375_vm0, %v918_v5 }
  0x28 PF: > { %v733_v6 = vld [vmem:[%s330_s27] sm:$0xff]   ;;  %vm388_vm1 = vcmask 261120   ;;  %v737_v9 = vld [vmem:[%s337_s29] sm:$0xff]   ;;  %vm448_vm2 = vcmask 1041409   ;;  %vm452_vm3 = vcmask 254976   ;;  %p726_p10 = scmp.ne.s32.totalorder %s907_s20, 1 }
  0x29   : > { %v734_v7 = vunpack.c.l.bf16 %v733_v6  ;;  %v735_v8 = vunpack.c.h.bf16 %v733_v6  ;;  %v738_v10 = vunpack.c.l.bf16 %v737_v9  ;;  %v739_v11 = vunpack.c.h.bf16 %v737_v9  ;;  %s919_s18 = smov (!%p726_p10), 32   ;;  %s920_s7 = smov (!%p726_p10), 96  }
  0x2a   : > { %s923_s11 = smov (!%p726_p10), 64   ;;  %s924_s30 = smov (!%p726_p10), 112  }
  0x2b   : > { %v389_v12 = vsel %vm388_vm1, %v734_v7, 0.0  ;;  %v396_v13 = vsel %vm388_vm1, %v735_v8, 0.0  ;;  %v403_v14 = vsel %vm388_vm1, %v734_v7, -inf  ;;  %v410_v15 = vsel %vm388_vm1, %v735_v8, -inf }
  0x2c   : > { %v390_v16 = vrot.slane %v389_v12, 4  ;;  %v397_v17 = vrot.slane %v396_v13, 4  ;;  %v417_v18 = vsel %vm388_vm1, %v738_v10, 0.0  ;;  %v424_v19 = vsel %vm388_vm1, %v739_v11, 0.0 }
  0x2d   : > { %v418_v20 = vrot.slane %v417_v18, 4  ;;  %v425_v21 = vrot.slane %v424_v19, 4  ;;  %v404_v22 = vrot.slane %v403_v14, 4  ;;  %v411_v23 = vrot.slane %v410_v15, 4  ;;  %v445_v58 = vld [vmem:[#allocation2] sm:$0x3] }
  0x2e   : > { %v391_v24 = vadd.f32 %v390_v16, %v389_v12  ;;  %v398_v25 = vadd.f32 %v397_v17, %v396_v13  ;;  %v431_v26 = vsel %vm388_vm1, %v738_v10, -inf  ;;  %v438_v27 = vsel %vm388_vm1, %v739_v11, -inf  ;;  %v454_v63 = vld [vmem:[#allocation4] sm:$0x3]  ;;  %v461_v2 = vld [vmem:[#allocation3] sm:$0x3] }
  0x2f   : > { %v419_v28 = vadd.f32 %v418_v20, %v417_v18  ;;  %v426_v29 = vadd.f32 %v425_v21, %v424_v19  ;;  %v405_v30 = vmax.f32 %v403_v14, %v404_v22  ;;  %v412_v31 = vmax.f32 %v410_v15, %v411_v23  ;;  %v468_v13 = vld [vmem:[#allocation5] sm:$0x3] }
  0x30   : > { %v392_v32 = vrot.slane %v391_v24, 2  ;;  %v399_v33 = vrot.slane %v398_v25, 2  ;;  %v432_v34 = vrot.slane %v431_v26, 4  ;;  %v439_v35 = vrot.slane %v438_v27, 4 }
  0x31   : > { %v420_v36 = vrot.slane %v419_v28, 2  ;;  %v427_v37 = vrot.slane %v426_v29, 2  ;;  %v406_v38 = vrot.slane %v405_v30, 2  ;;  %v413_v39 = vrot.slane %v412_v31, 2 }
  0x32   : > { %v393_v40 = vadd.f32 %v392_v32, %v391_v24  ;;  %v400_v41 = vadd.f32 %v399_v33, %v398_v25  ;;  %v433_v42 = vmax.f32 %v431_v26, %v432_v34  ;;  %v440_v43 = vmax.f32 %v438_v27, %v439_v35 }
  0x33   : > { %v421_v44 = vadd.f32 %v420_v36, %v419_v28  ;;  %v428_v45 = vadd.f32 %v427_v37, %v426_v29  ;;  %v407_v46 = vmax.f32 %v405_v30, %v406_v38  ;;  %v414_v47 = vmax.f32 %v412_v31, %v413_v39 }
  0x34   : > { %v394_v48 = vrot.slane %v393_v40, 1  ;;  %v401_v49 = vrot.slane %v400_v41, 1  ;;  %v434_v50 = vrot.slane %v433_v42, 2  ;;  %v441_v51 = vrot.slane %v440_v43, 2 }
  0x35   : > { %v422_v52 = vrot.slane %v421_v44, 1  ;;  %v429_v53 = vrot.slane %v428_v45, 1  ;;  %v408_v54 = vrot.slane %v407_v46, 1  ;;  %v415_v55 = vrot.slane %v414_v47, 1 }
  0x36   : > { %v395_v56 = vadd.f32 %v394_v48, %v393_v40  ;;  %v402_v57 = vadd.f32 %v401_v49, %v400_v41  ;;  %v435_v59 = vmax.f32 %v433_v42, %v434_v50  ;;  %v442_v60 = vmax.f32 %v440_v43, %v441_v51 }
  0x37   : > { %v423_v61 = vadd.f32 %v422_v52, %v421_v44  ;;  %v430_v62 = vadd.f32 %v429_v53, %v428_v45  ;;  %v409_v0 = vmax.f32 %v407_v46, %v408_v54  ;;  %v416_v1 = vmax.f32 %v414_v47, %v415_v55 }
  0x38   : > { %v449_v3 = vsel %vm448_vm2, %v402_v57, %v395_v56  ;;  %v436_v4 = vrot.slane %v435_v59, 1  ;;  %v443_v5 = vrot.slane %v442_v60, 1 }
  0x39   : > { %v451_v6 = vadd.f32 %v449_v3, %v445_v58  ;;  %v457_v7 = vsel %vm448_vm2, %v430_v62, %v423_v61  ;;  %v464_v8 = vsel %vm448_vm2, %v416_v1, %v409_v0 }
  0x3a   : > { %v459_v9 = vadd.f32 %v457_v7, %v454_v63  ;;  %v466_v10 = vmax.f32 %v461_v2, %v464_v8  ;;  %v437_v11 = vmax.f32 %v435_v59, %v436_v4  ;;  %v444_v12 = vmax.f32 %v442_v60, %v443_v5 }
  0x3b   : > { %453 = vst.msk [vmem:[#allocation2] sm:$0x3] %vm452_vm3, %v451_v6  ;;  %478 = sbr.rel (%p726_p10) target bundleno = 638 (0x27e), region = 130 }
  0x3c   : > { %460 = vst.msk [vmem:[#allocation4] sm:$0x3] %vm452_vm3, %v459_v9  ;;  %467 = vst.msk [vmem:[#allocation3] sm:$0x3] %vm452_vm3, %v466_v10  ;;  %v471_v14 = vsel %vm448_vm2, %v444_v12, %v437_v11 }
  0x3d   : > { %v473_v15 = vmax.f32 %v468_v13, %v471_v14 }
  0x3f   : > { %474 = vst.msk [vmem:[#allocation5] sm:$0x3] %vm452_vm3, %v473_v15 }
  0x40   : > { %v517_v20 = vld [vmem:[%s1126_s2 + $0x78] sm:$0xff]  ;;  %v921_v21 = vmov 0.0   ;;  %v516_v22 = vld [vmem:[%s1126_s2 + $0x70] sm:$0xff]  ;;  %vm922_vm4 = vmmov 0   ;;  %v515_v23 = vld [vmem:[%s1126_s2 + $0x68] sm:$0xff]  ;;  %vm498_vm5 = vcmask 523264  }
  0x41   : > { %757 = vmatprep.subr.mxu0 %v921_v21  ;;  %789 = vmatprep.mubr.msk.f32.mxu0 %vm922_vm4, %v921_v21  ;;  %v514_v24 = vld [vmem:[%s1126_s2 + $0x60] sm:$0xff]  ;;  %v513_v25 = vld [vmem:[%s1126_s2 + $0x58] sm:$0xff]  ;;  %v512_v26 = vld [vmem:[%s1126_s2 + $0x50] sm:$0xff]  ;;  %vm500_vm6 = vcmask 785408   ;;  %vm610_vm7 = vcmask 386048  }
  0x42   : > { %758 = vmatpush3.msra.mxu0 %v517_v20  ;;  %v511_v27 = vld [vmem:[%s1126_s2 + $0x48] sm:$0xff]  ;;  %v510_v28 = vld [vmem:[%s1126_s2 + $0x40] sm:$0xff]  ;;  %v509_v29 = vld [vmem:[%s1126_s2 + $0x38] sm:$0xff] }
  0x43   : > { %v481_v16 = vld [vmem:[#allocation3] sm:$0x3]  ;;  %v482_v17 = vld [vmem:[#allocation4] sm:$0x3]  ;;  %759 = vmatprep.subr.mxu0 %v921_v21  ;;  %v508_v30 = vld [vmem:[%s1126_s2 + $0x30] sm:$0xff] }
  0x44   : > { %486 = vrot.lane.b32.xlu0 %v481_v16, %s919_s18  ;;  %v483_v18 = vmul.f32 0.0625, %v482_v17  ;;  %760 = vmatpush3.msra.mxu0 %v516_v22  ;;  %v507_v31 = vld [vmem:[%s1126_s2 + $0x28] sm:$0xff]  ;;  %v506_v32 = vld [vmem:[%s1126_s2 + $0x20] sm:$0xff]  ;;  %v505_v33 = vld [vmem:[%s1126_s2 + $0x18] sm:$0xff] }
  0x45   : > { %761 = vmatprep.subr.mxu0 %v921_v21  ;;  %v504_v34 = vld [vmem:[%s1126_s2 + $0x10] sm:$0xff]  ;;  %v503_v35 = vld [vmem:[%s1126_s2 + $0x8] sm:$0xff]  ;;  %v502_v36 = vld [vmem:[%s1126_s2] sm:$0xff] }
  0x46   : > { %v484_v19 = vld [vmem:[#allocation5] sm:$0x3]  ;;  %762 = vmatpush3.msra.mxu0 %v515_v23  ;;  %v479_v37 = vld [vmem:[#allocation2] sm:$0x3] }
  0x47   : > { %494 = vrot.lane.b32.xlu1 %v484_v19, %s920_s7  ;;  %763 = vmatprep.subr.mxu0 %v921_v21  ;;  %v480_v39 = vmul.f32 0.0625, %v479_v37  ;;  %v727_v45 = vld [vmem:[%s1127_s3] ss:$0 sm:$0xff] }
  0x48   : > { %490 = vrot.lane.b32.xlu0 %v483_v18, %s923_s11  ;;  %764 = vmatpush3.msra.mxu0 %v514_v24  ;;  %v595_v52 = vld [vmem:[%s1128_s4] sm:$0x3] }
  0x49   : > { %765 = vmatprep.subr.mxu0 %v921_v21 }
  0x4a   : > { %766 = vmatpush3.msra.mxu0 %v513_v25 }
  0x4b   : > { %767 = vmatprep.subr.mxu0 %v921_v21 }
  0x4c   : > { %768 = vmatpush3.msra.mxu0 %v512_v26 }
  0x4d   : > { %769 = vmatprep.subr.mxu0 %v921_v21 }
  0x4e   : > { %770 = vmatpush3.msra.mxu0 %v511_v27 }
  0x4f   : > { %771 = vmatprep.subr.mxu0 %v921_v21 }
  0x50   : > { %772 = vmatpush3.msra.mxu0 %v510_v28 }
  0x51   : > { %773 = vmatprep.subr.mxu0 %v921_v21 }
  0x52   : > { %774 = vmatpush3.msra.mxu0 %v509_v29 }
  0x53   : > { %775 = vmatprep.subr.mxu0 %v921_v21 }
  0x54   : > { %776 = vmatpush3.msra.mxu0 %v508_v30 }
  0x55   : > { %777 = vmatprep.subr.mxu0 %v921_v21 }
  0x56   : > { %778 = vmatpush3.msra.mxu0 %v507_v31 }
  0x57   : > { %779 = vmatprep.subr.mxu0 %v921_v21 }
  0x58   : > { %780 = vmatpush3.msra.mxu0 %v506_v32 }
  0x59   : > { %781 = vmatprep.subr.mxu0 %v921_v21 }
  0x5a   : > { %782 = vmatpush3.msra.mxu0 %v505_v33 }
  0x5b   : > { %783 = vmatprep.subr.mxu0 %v921_v21 }
  0x5c   : > { %784 = vmatpush3.msra.mxu0 %v504_v34 }
  0x5d   : > { %785 = vmatprep.subr.mxu0 %v921_v21 }
  0x5e   : > { %786 = vmatpush3.msra.mxu0 %v503_v35 }
  0x5f   : > { %787 = vmatprep.subr.mxu0 %v921_v21 }
  0x60   : > { %788 = vmatpush3.msra.mxu0 %v502_v36 }
  0xb6   : > { %v487_v38 = vpop.permute.xlu0 %486 }
  0xb7   : > { %v497_v41 = vsel %vm388_vm1, %v480_v39, %v487_v38 }
  0xb9   : > { %v495_v40 = vpop.permute.xlu1 %494 }
  0xba   : > { %v491_v42 = vpop.permute.xlu0 %490 }
  0xbb   : > { %v499_v43 = vsel %vm498_vm5, %v497_v41, %v491_v42 }
  0xbc   : > { %v501_v44 = vsel %vm500_vm6, %v499_v43, %v495_v40 }
  0xbd   : > { %790 = vmatmul.mubr.f32.vlgmr.msra.gmra.mxu0 %v501_v44 }
 0x17d   : > { %v591_v46 = vpop.f32.mrf.mxu0 }
 0x17e   : > { %v592_v47 = vadd.f32 %v727_v45, %v591_v46 }
 0x17f   : > { %v791_v48 = vpop.f32.mrf.mxu0 }
 0x180   : > { %v596_v49 = vmul.f32 0.5, %v592_v47 }
 0x182   : > { %v597_v50 = vmul.f32 1.442695, %v596_v49 }
 0x184   : > { %847 = vpow2.f32 %v597_v50 }
 0x191   : > { %v848_v51 = vpop.eup %847 }
 0x192   : > { %600 = vrot.lane.b32.xlu1 %v848_v51, %s924_s30 }
 0x204   : > { %v601_v53 = vpop.permute.xlu1 %600 }
 0x205   : > { %v603_v54 = vmul.f32 %v601_v53, %v595_v52 }
 0x207   : > { %v604_v55 = vadd.f32 %v603_v54, %v592_v47 }
 0x209   : > { %606 = vrot.lane.b32.xlu0 %v604_v55, %s919_s18 }
 0x27b   : > { %v607_v56 = vpop.permute.xlu0 %606 }
 0x27c   : > { %v609_v57 = vsel %vm388_vm1, %v592_v47, %v607_v56 }
 0x27d   : > { %611 = vst.msk [vmem:[#allocation8] sm:$0x3] %vm610_vm7, %v609_v57 }
 0x27e PF: > { %p1094_p11 = scmp.eq.s32.totalorder %s714_s23, 1  ;;  %s925_s9 = smov [#allocation8]  }
 0x27f   : > { %s621_s20 = sshll.u32 %s925_s9, 4  ;;  %s622_s20 = int_to_ptr.vmem [resolvable:$true] %s621_s20 }
 0x280   : > { %s849_s10 = scalar_lea.vmem %s622_s20, 32  ;;  %p856_p1 = scmp.lt.s32.totalorder %s622_s20, %s622_s20 }
 0x281   : > { %p850_p12 = scmp.ne.s32.totalorder %s622_s20, %s849_s10  ;;  %p857_p2 = scmp.lt.s32.totalorder %s849_s10, %s849_s10 }
 0x283   : > { %p851_p13 = pnand %p850_p12, %p1094_p11  ;;  %p858_p3 = por %p857_p2, %p856_p1 }
 0x285   : > { %p852_p0 = pneg %p851_p13 }
 0x287   : > { %p859_p4 = pnand %p858_p3, %p852_p0 }
 0x289   : > { %862 = shalt.err (!%p859_p4)
}
 0x28a   : > { %793 = dma.vmem_to_hbm [thread:$0]  (%p1094_p11), %s622_s20, 32, %s1129_s5, [#allocation9]  }
 0x28b   : > { %894 = dma.done.wait (%p1094_p11), [#allocation9], 32  }
 0x28c   : > { %896 = vsyncadd (%p1094_p11), [#allocation9], 4294967264 }
 0x28d PF: > { %s16_s22 = sadd.s32 1, %s915_s22   ;;  %s1132_s18 = smov %s903_s19 }
 0x28e   : > { %p13_p5 = scmp.ge.s32.totalorder %s16_s22, 4   ;;  %s1133_s19 = smov %s996_s28 }
 0x28f   : > { %s1134_s20 = smov %s911_s21  ;;  %s1135_s21 = smov %s1137_s24 }
 0x290   :  { %15 = sbr.rel (!%p13_p5) target bundleno = 3 (0x3), region = 174 }
 0x295   :  { %634 = vsyncpa [#allocation9], 1 }
 0x296   :  { %636 = vsyncpa [#allocation9 + $0x1], 1 }

</bundles_post_ra>
